<compile_context>
chip_gen: v7x
topology: tpu7x:2x2x1
jax: 0.10.0
libtpu: 0.0.40
codegen_flags: <defaults>
</compile_context>

<pallas_src>
import functools
import math

import jax
import jax.numpy as jnp
from jax.experimental import pallas as pl
from jax.experimental.pallas import tpu as pltpu


def _round_up(x, m):
    return (x + m - 1) // m * m


def _single_tile_kernel(q_ref, k_ref, v_ref, o_ref, *, scale, seq_len, need_mask):
    """Whole key axis in one tile: plain softmax, no online accumulators.

    Blocks: q/o (Hb, C, Tq), k/v (Hb, C, Tk) -- channel-major, Tk == padded T.
    """
    # Fold scale^2 = 1/sqrt(ch) into q only (single small VPU pass).
    q = (q_ref[...] * scale).astype(q_ref.dtype)          # (Hb, C, Tq)

    # Transposed scores: w[h, s, t] = sum_c k[h, c, s] * q[h, c, t]  (MXU, f32 acc)
    w = jax.lax.dot_general(
        k_ref[...], q,
        dimension_numbers=(((1,), (1,)), ((0,), (0,))),
        preferred_element_type=jnp.float32)               # (Hb, Tk, Tq)

    if need_mask:  # static: only emitted when T was padded to the tile size
        k_tile = k_ref.shape[2]
        key_pos = jax.lax.broadcasted_iota(jnp.int32, (1, k_tile, 1), 1)
        w = jnp.where(key_pos < seq_len, w, -1e30)

    # Softmax over the key (sublane) axis.
    m = jnp.max(w, axis=1, keepdims=True)                 # (Hb, 1, Tq)
    p = jnp.exp(w - m)                                    # (Hb, Tk, Tq) f32
    l = jnp.sum(p, axis=1, keepdims=True)                 # (Hb, 1, Tq)

    # a[h, c, t] = sum_s v[h, c, s] * p[h, s, t]; probs cast to input dtype.
    pv = jax.lax.dot_general(
        v_ref[...], p.astype(v_ref.dtype),
        dimension_numbers=(((2,), (1,)), ((0,), (0,))),
        preferred_element_type=jnp.float32)               # (Hb, C, Tq) f32

    inv = pl.reciprocal(l, approx=True)                   # EUP slot
    inv = inv * (2.0 - l * inv)                           # one Newton step
    o_ref[...] = (pv * inv).astype(o_ref.dtype)


def _flash_qkv_kernel(q_ref, k_ref, v_ref, o_ref, m_sc, l_sc, acc_sc,
                      *, scale, seq_len, need_mask):
    """One (head-block, query-tile, key-tile) step of flash attention.

    Blocks: q (Hb, C, Tq), k/v (Hb, C, Tk), o (Hb, C, Tq) -- channel-major.
    Scratch: m/l (Hb, 1, Tq) f32, acc (Hb, C, Tq) f32.
    """
    ki = pl.program_id(2)
    k_tile = k_ref.shape[2]

    @pl.when(ki == 0)
    def _():
        m_sc[...] = jnp.full_like(m_sc, -jnp.inf)
        l_sc[...] = jnp.zeros_like(l_sc)
        acc_sc[...] = jnp.zeros_like(acc_sc)

    q = (q_ref[...] * scale).astype(q_ref.dtype)          # (Hb, C, Tq)
    k = k_ref[...]                                        # (Hb, C, Tk)

    # Transposed scores: w[h, s, t] = sum_c k[h, c, s] * q[h, c, t].
    w = jax.lax.dot_general(
        k, q,
        dimension_numbers=(((1,), (1,)), ((0,), (0,))),
        preferred_element_type=jnp.float32)               # (Hb, Tk, Tq) f32

    if need_mask:  # static: only emitted when T was padded to the tile size
        key_pos = ki * k_tile + jax.lax.broadcasted_iota(
            jnp.int32, (1, k_tile, 1), 1)
        w = jnp.where(key_pos < seq_len, w, -1e30)

    # Online softmax over the key (sublane) axis.
    m_prev = m_sc[...]                                    # (Hb, 1, Tq)
    m_new = jnp.maximum(m_prev, jnp.max(w, axis=1, keepdims=True))
    alpha = jnp.exp(m_prev - m_new)                       # (Hb, 1, Tq)
    p = jnp.exp(w - m_new)                                # (Hb, Tk, Tq) f32
    l_sc[...] = alpha * l_sc[...] + jnp.sum(p, axis=1, keepdims=True)

    # a[h, c, t] += sum_s v[h, c, s] * p[h, s, t]
    pv = jax.lax.dot_general(
        v_ref[...], p.astype(v_ref.dtype),
        dimension_numbers=(((2,), (1,)), ((0,), (0,))),
        preferred_element_type=jnp.float32)               # (Hb, C, Tq) f32
    acc_sc[...] = alpha * acc_sc[...] + pv
    m_sc[...] = m_new

    @pl.when(ki == pl.num_programs(2) - 1)
    def _():
        l = l_sc[...]
        inv = pl.reciprocal(l, approx=True)               # EUP slot
        inv = inv * (2.0 - l * inv)                       # one Newton step
        o_ref[...] = (acc_sc[...] * inv).astype(o_ref.dtype)


def _vmem_bytes(hb, c_pad, tq, tk, itemsize):
    io = 2 * hb * c_pad * (2 * tq + 2 * tk) * itemsize      # double-buffered q,k,v,o
    scratch = hb * c_pad * tq * 4 + 2 * hb * 8 * tq * 4     # acc + m/l (sublane-padded)
    transient = 3 * hb * tk * tq * 4                        # score/prob temporaries
    return io + scratch + transient


def qkv_attention_legacy(qkv, n_heads, *, seq_tile=None, max_heads_per_block=8,
                         vmem_budget_bytes=24 * 1024 * 1024):
    """qkv: [N, H*3*C, T] -> [N, H*C, T]; matches QKVAttentionLegacy.forward."""
    bs, width, length = qkv.shape
    assert width % (3 * n_heads) == 0
    ch = width // (3 * n_heads)
    B = bs * n_heads
    dtype = qkv.dtype
    itemsize = jnp.dtype(dtype).itemsize

    # Split heads and q/k/v (channel-major, like the PyTorch reference).
    qkv_r = qkv.reshape(B, 3 * ch, length)
    q = qkv_r[:, 0 * ch:1 * ch, :]
    k = qkv_r[:, 1 * ch:2 * ch, :]
    v = qkv_r[:, 2 * ch:3 * ch, :]

    # Lane-dense tiling: T padded to a multiple of a 128-aligned seq tile,
    # C padded to a multiple of 8 sublanes.
    if seq_tile is None:
        seq_tile = min(512, _round_up(length, 128))
    assert seq_tile % 128 == 0
    tq = tk = seq_tile
    t_pad = _round_up(length, seq_tile)
    c_pad = _round_up(ch, 8)

    if (t_pad != length) or (c_pad != ch):
        pad = ((0, 0), (0, c_pad - ch), (0, t_pad - length))
        q = jnp.pad(q, pad)
        k = jnp.pad(k, pad)
        v = jnp.pad(v, pad)

    # Pack multiple heads per grid step (amortizes per-step overhead for small
    # C*T) while keeping the working set inside a v7x-safe VMEM budget.
    hb = 1
    for cand in range(1, min(B, max_heads_per_block) + 1):
        if B % cand == 0 and _vmem_bytes(cand, c_pad, tq, tk, itemsize) <= vmem_budget_bytes:
            hb = cand

    n_hb = B // hb
    n_qt = t_pad // tq
    n_kt = t_pad // tk

    scale = 1.0 / math.sqrt(ch)  # == (ch ** -0.25) ** 2, applied to q only
    need_mask = (t_pad != length)

    est = _vmem_bytes(hb, c_pad, tq, tk, itemsize)
    vmem_limit = int(min(64 * 1024 * 1024, max(32 * 1024 * 1024, 2 * est)))

    cost = pl.CostEstimate(
        flops=4 * B * t_pad * t_pad * c_pad,
        transcendentals=B * t_pad * t_pad + B * t_pad,
        bytes_accessed=4 * B * c_pad * t_pad * itemsize)

    q_spec = lambda: pl.BlockSpec((hb, c_pad, tq), lambda h, qi, ki: (h, 0, qi))

    if n_kt == 1:
        # Fast path: one key tile -> plain softmax, no scratch, 2-D parallel grid.
        out = pl.pallas_call(
            functools.partial(_single_tile_kernel, scale=scale,
                              seq_len=length, need_mask=need_mask),
            out_shape=jax.ShapeDtypeStruct((B, c_pad, t_pad), dtype),
            grid_spec=pltpu.PrefetchScalarGridSpec(
                num_scalar_prefetch=0,
                grid=(n_hb, n_qt),
                in_specs=[pl.BlockSpec((hb, c_pad, tq), lambda h, qi: (h, 0, qi)),
                          pl.BlockSpec((hb, c_pad, tk), lambda h, qi: (h, 0, 0)),
                          pl.BlockSpec((hb, c_pad, tk), lambda h, qi: (h, 0, 0))],
                out_specs=pl.BlockSpec((hb, c_pad, tq), lambda h, qi: (h, 0, qi))),
            compiler_params=pltpu.CompilerParams(
                dimension_semantics=("parallel", "parallel"),
                vmem_limit_bytes=vmem_limit),
            cost_estimate=cost,
        )(q, k, v)
    else:
        out = pl.pallas_call(
            functools.partial(_flash_qkv_kernel, scale=scale,
                              seq_len=length, need_mask=need_mask),
            out_shape=jax.ShapeDtypeStruct((B, c_pad, t_pad), dtype),
            grid_spec=pltpu.PrefetchScalarGridSpec(
                num_scalar_prefetch=0,
                grid=(n_hb, n_qt, n_kt),
                in_specs=[pl.BlockSpec((hb, c_pad, tq), lambda h, qi, ki: (h, 0, qi)),
                          pl.BlockSpec((hb, c_pad, tk), lambda h, qi, ki: (h, 0, ki)),
                          pl.BlockSpec((hb, c_pad, tk), lambda h, qi, ki: (h, 0, ki))],
                out_specs=pl.BlockSpec((hb, c_pad, tq), lambda h, qi, ki: (h, 0, qi)),
                scratch_shapes=[
                    pltpu.VMEM((hb, 1, tq), jnp.float32),       # running max m
                    pltpu.VMEM((hb, 1, tq), jnp.float32),       # running sum l
                    pltpu.VMEM((hb, c_pad, tq), jnp.float32),   # output accumulator
                ]),
            compiler_params=pltpu.CompilerParams(
                dimension_semantics=("parallel", "parallel", "arbitrary"),
                vmem_limit_bytes=vmem_limit),
            cost_estimate=cost,
        )(q, k, v)

    out = out[:, :ch, :length]
    return out.reshape(bs, n_heads * ch, length)


def _reference(qkv, n_heads):
    bs, width, length = qkv.shape
    ch = width // (3 * n_heads)
    q, k, v = jnp.split(qkv.reshape(bs * n_heads, ch * 3, length), 3, axis=1)
    scale = 1 / math.sqrt(math.sqrt(ch))
    weight = jnp.einsum('bct,bcs->bts', q * scale, k * scale)
    weight = jax.nn.softmax(weight.astype(jnp.float32), axis=-1).astype(weight.dtype)
    a = jnp.einsum('bts,bcs->bct', weight, v)
    return a.reshape(bs, -1, length)


if __name__ == "__main__":
    key = jax.random.PRNGKey(0)
    k1, k2, k3 = jax.random.split(key, 3)

    # Case 1: N=2, n_heads=2, C=8, T=16 -- single-key-tile fast path.
    n_heads = 2
    N, C, T = 2, 8, 16
    qkv1 = jax.random.normal(k1, (N, n_heads * 3 * C, T), dtype=jnp.float32)
    out1 = qkv_attention_legacy(qkv1, n_heads)
    jax.block_until_ready(out1)
    ref1 = _reference(qkv1, n_heads)
    assert out1.shape == (N, n_heads * C, T)
    assert jnp.allclose(out1, ref1, atol=1e-4, rtol=1e-4), \
        float(jnp.max(jnp.abs(out1 - ref1)))

    # Case 2: exercises C padding (4 -> 8), T padding + key masking (40 -> 128),
    # and an odd head count (head-block packing = 3).
    n_heads2 = 3
    N2, C2, T2 = 1, 4, 40
    qkv2 = jax.random.normal(k2, (N2, n_heads2 * 3 * C2, T2), dtype=jnp.float32)
    out2 = qkv_attention_legacy(qkv2, n_heads2)
    jax.block_until_ready(out2)
    ref2 = _reference(qkv2, n_heads2)
    assert out2.shape == (N2, n_heads2 * C2, T2)
    assert jnp.allclose(out2, ref2, atol=1e-4, rtol=1e-4), \
        float(jnp.max(jnp.abs(out2 - ref2)))

    # Case 3: forces the multi-key-tile flash path (seq_tile=128, T=200 ->
    # 2 query tiles x 2 key tiles, last key tile masked).
    n_heads3 = 2
    N3, C3, T3 = 1, 16, 200
    qkv3 = jax.random.normal(k3, (N3, n_heads3 * 3 * C3, T3), dtype=jnp.float32)
    out3 = qkv_attention_legacy(qkv3, n_heads3, seq_tile=128)
    jax.block_until_ready(out3)
    ref3 = _reference(qkv3, n_heads3)
    assert out3.shape == (N3, n_heads3 * C3, T3)
    assert jnp.allclose(out3, ref3, atol=1e-4, rtol=1e-4), \
        float(jnp.max(jnp.abs(out3 - ref3)))

    print("KERNEL_OK")
</pallas_src>

<mosaic_0001>
module attributes {stable_mosaic.version = 11 : i64} {
  func.func @_single_tile_kernel(%arg0: i32, %arg1: i32, %arg2: memref<4x8x128xf32, #tpu.memory_space<vmem>>, %arg3: memref<4x8x128xf32, #tpu.memory_space<vmem>>, %arg4: memref<4x8x128xf32, #tpu.memory_space<vmem>>, %arg5: memref<4x8x128xf32, #tpu.memory_space<vmem>>) attributes {dimension_semantics = [#tpu.dimension_semantics<parallel>, #tpu.dimension_semantics<parallel>], iteration_bounds = array<i64: 1, 1>, scalar_prefetch = 0 : i64, scratch_operands = 0 : i64, tpu.core_type = #tpu.core_type<tc>, window_params = [{transform_indices = @transform_0, window_bounds = array<i64: 4, 8, 128>}, {transform_indices = @transform_1, window_bounds = array<i64: 4, 8, 128>}, {transform_indices = @transform_2, window_bounds = array<i64: 4, 8, 128>}, {transform_indices = @transform_3, window_bounds = array<i64: 4, 8, 128>}]} {
    %c0 = arith.constant 0 : index
    %c0_0 = arith.constant 0 : index
    %c0_1 = arith.constant 0 : index
    %0 = vector.load %arg2[%c0, %c0_0, %c0_1] : memref<4x8x128xf32, #tpu.memory_space<vmem>>, vector<4x8x128xf32>
    %cst = arith.constant 0.353553385 : f32
    %1 = vector.broadcast %cst : f32 to vector<4x8x128xf32>
    %2 = arith.mulf %0, %1 : vector<4x8x128xf32>
    %c0_2 = arith.constant 0 : index
    %c0_3 = arith.constant 0 : index
    %c0_4 = arith.constant 0 : index
    %3 = vector.load %arg3[%c0_2, %c0_3, %c0_4] : memref<4x8x128xf32, #tpu.memory_space<vmem>>, vector<4x8x128xf32>
    %cst_5 = arith.constant dense<0.000000e+00> : vector<4x128x128xf32>
    %4 = tpu.matmul %3, %2, %cst_5 {dimension_numbers = #tpu.dot_dimension_numbers<[1], [1], [2], [2], [0, 0, 0, 2, 1, 2], [0], [0]>} : vector<4x8x128xf32>, vector<4x8x128xf32>, vector<4x128x128xf32> -> vector<4x128x128xf32>
    %5 = tpu.iota {dimensions = array<i32: 1>} : vector<1x128x1xi32>
    %c16_i32 = arith.constant 16 : i32
    %6 = vector.broadcast %c16_i32 : i32 to vector<1x128x1xi32>
    %7 = arith.cmpi slt, %5, %6 : vector<1x128x1xi32>
    %cst_6 = arith.constant -1.000000e+30 : f32
    %8 = vector.shape_cast %7 : vector<1x128x1xi1> to vector<1x128x1xi1>
    %9 = vector.broadcast %8 : vector<1x128x1xi1> to vector<4x128x128xi1>
    %10 = vector.broadcast %cst_6 : f32 to vector<4x128x128xf32>
    %11 = arith.select %9, %4, %10 : vector<4x128x128xi1>, vector<4x128x128xf32>
    %cst_7 = arith.constant dense<0xFF800000> : vector<4x128xf32>
    %12 = vector.multi_reduction <maximumf>, %11, %cst_7 [1] : vector<4x128x128xf32> to vector<4x128xf32>
    %13 = vector.shape_cast %12 : vector<4x128xf32> to vector<4x1x128xf32>
    %14 = vector.broadcast %13 : vector<4x1x128xf32> to vector<4x128x128xf32>
    %15 = arith.subf %11, %14 : vector<4x128x128xf32>
    %16 = math.exp %15 : vector<4x128x128xf32>
    %cst_8 = arith.constant dense<0.000000e+00> : vector<4x128xf32>
    %17 = vector.multi_reduction <add>, %16, %cst_8 [1] : vector<4x128x128xf32> to vector<4x128xf32>
    %18 = vector.shape_cast %17 : vector<4x128xf32> to vector<4x1x128xf32>
    %c0_9 = arith.constant 0 : index
    %c0_10 = arith.constant 0 : index
    %c0_11 = arith.constant 0 : index
    %19 = vector.load %arg4[%c0_9, %c0_10, %c0_11] : memref<4x8x128xf32, #tpu.memory_space<vmem>>, vector<4x8x128xf32>
    %cst_12 = arith.constant dense<0.000000e+00> : vector<4x8x128xf32>
    %20 = tpu.matmul %19, %16, %cst_12 {dimension_numbers = #tpu.dot_dimension_numbers<[2], [1], [1], [2], [0, 0, 0, 1, 1, 2], [0], [0]>} : vector<4x8x128xf32>, vector<4x128x128xf32>, vector<4x8x128xf32> -> vector<4x8x128xf32>
    %21 = tpu.reciprocal %18 {approx = true} : vector<4x1x128xf32> -> vector<4x1x128xf32>
    %22 = arith.mulf %18, %21 : vector<4x1x128xf32>
    %cst_13 = arith.constant 2.000000e+00 : f32
    %23 = vector.broadcast %cst_13 : f32 to vector<4x1x128xf32>
    %24 = arith.subf %23, %22 : vector<4x1x128xf32>
    %25 = arith.mulf %21, %24 : vector<4x1x128xf32>
    %26 = vector.broadcast %25 : vector<4x1x128xf32> to vector<4x8x128xf32>
    %27 = arith.mulf %20, %26 : vector<4x8x128xf32>
    %c0_14 = arith.constant 0 : index
    %c0_15 = arith.constant 0 : index
    %c0_16 = arith.constant 0 : index
    %28 = vector.load %arg5[%c0_14, %c0_15, %c0_16] : memref<4x8x128xf32, #tpu.memory_space<vmem>>, vector<4x8x128xf32>
    tpu.vector_store %arg5[%c0_14, %c0_15, %c0_16], %27 {strides = array<i32>} : memref<4x8x128xf32, #tpu.memory_space<vmem>>, vector<4x8x128xf32>,
    return
  }
  func.func @transform_0(%arg0: i32, %arg1: i32) -> (i32, i32, i32) {
    %c0_i32 = arith.constant 0 : i32
    %c0_i32_0 = arith.constant 0 : i32
    return %arg0, %c0_i32, %arg1 : i32, i32, i32
  }
  func.func @transform_1(%arg0: i32, %arg1: i32) -> (i32, i32, i32) {
    %c0_i32 = arith.constant 0 : i32
    %c0_i32_0 = arith.constant 0 : i32
    %c0_i32_1 = arith.constant 0 : i32
    return %arg0, %c0_i32, %c0_i32_0 : i32, i32, i32
  }
  func.func @transform_2(%arg0: i32, %arg1: i32) -> (i32, i32, i32) {
    %c0_i32 = arith.constant 0 : i32
    %c0_i32_0 = arith.constant 0 : i32
    %c0_i32_1 = arith.constant 0 : i32
    return %arg0, %c0_i32, %c0_i32_0 : i32, i32, i32
  }
  func.func @transform_3(%arg0: i32, %arg1: i32) -> (i32, i32, i32) {
    %c0_i32 = arith.constant 0 : i32
    %c0_i32_0 = arith.constant 0 : i32
    return %arg0, %c0_i32, %arg1 : i32, i32, i32
  }
}

</mosaic_0001>

<bundles_post_ra>
// kernel: tpu_custom_call.1
= control target key start
LH: loop header
LB: loop body
LE: loop exit
PB: predicated region body
PF: predicated region fallthrough
CT: control target
= control target key end

     0   :  { %8 = vsyncpa [#allocation3], 0  ;;  %s2767_s0 = inlined_call_operand.hbm [shape: f32[4,8,128], index: 0, kind: input, shape index: {}]   ;;  %s2768_s1 = inlined_call_operand.hbm [shape: f32[4,8,128], index: 1, kind: input, shape index: {}]   ;;  %s2769_s2 = inlined_call_operand.hbm [shape: f32[4,8,128], index: 2, kind: input, shape index: {}]   ;;  %s2770_s3 = inlined_call_operand.hbm [shape: f32[4,8,128], index: 3, kind: output, shape index: {}]  }
   0x1   :  { %9 = vsyncpa [#allocation6], 0 }
   0x2   :  { %10 = vsyncpa [#allocation4], 0  ;;  %s2459_s12 = smov [#allocation5]   ;;  %s2460_s14 = smov [#allocation2]  }
   0x3   :  { %s28_s13 = sshll.u32 %s2459_s12, 4  ;;  %s16_s15 = sshll.u32 %s2460_s14, 4  ;;  %s29_s13 = int_to_ptr.vmem [resolvable:$true] %s28_s13  ;;  %s2488_s15 = int_to_ptr.vmem [resolvable:$true] %s16_s15 }
   0x4   :  { %s2365_s18 = scalar_lea.hbm %s2768_s1, 512 }
   0x5   :  { %p2366_p0 = scmp.ne.s32.totalorder %s2768_s1, %s2365_s18  ;;  %p2369_p1 = scmp.lt.u32.totalorder %s2365_s18, %s2768_s1 }
   0x7   :  { %p2371_p2 = pnand %p2369_p1, %p2366_p0 }
   0x9   :  { %2374 = shalt.err (!%p2371_p2)
}
   0xa   :  { %s2375_s23 = scalar_lea.vmem %s29_s13, 512  ;;  %p2380_p4 = scmp.lt.s32.totalorder %s29_s13, %s29_s13 }
   0xb   :  { %p2376_p3 = scmp.ne.s32.totalorder %s29_s13, %s2375_s23  ;;  %p2381_p5 = scmp.lt.s32.totalorder %s2375_s23, %s2375_s23 }
   0xd   :  { %p2382_p6 = por %p2381_p5, %p2380_p4 }
   0xf   :  { %p2383_p7 = pnand %p2382_p6, %p2376_p3 }
  0x11   :  { %2386 = shalt.err (!%p2383_p7)
}
  0x12   :  { %s2461_s24 = smov 128   ;;  %s2462_s25 = smov 8  }
  0x13   :  { %34 = dma.hbm_to_vmem [thread:$0]  %s2768_s1, 512, %s29_s13, [#allocation6], %s2461_s24, %s2461_s24, %s2462_s25  }
  0x14   :  { %s2387_s30 = scalar_lea.hbm %s2767_s0, 512 }
  0x15   :  { %p2388_p8 = scmp.ne.s32.totalorder %s2767_s0, %s2387_s30  ;;  %p2391_p9 = scmp.lt.u32.totalorder %s2387_s30, %s2767_s0 }
  0x17   :  { %p2393_p10 = pnand %p2391_p9, %p2388_p8 }
  0x19   :  { %2396 = shalt.err (!%p2393_p10)
}
  0x1a   :  { %s2397_s8 = scalar_lea.vmem %s2488_s15, 512  ;;  %p2402_p12 = scmp.lt.s32.totalorder %s2488_s15, %s2488_s15 }
  0x1b   :  { %p2398_p11 = scmp.ne.s32.totalorder %s2488_s15, %s2397_s8  ;;  %p2403_p13 = scmp.lt.s32.totalorder %s2397_s8, %s2397_s8 }
  0x1d   :  { %p2404_p0 = por %p2403_p13, %p2402_p12 }
  0x1f   :  { %p2405_p1 = pnand %p2404_p0, %p2398_p11 }
  0x21   :  { %2408 = shalt.err (!%p2405_p1)
}
  0x22   :  { %22 = dma.hbm_to_vmem [thread:$0]  %s2767_s0, 512, %s2488_s15, [#allocation3], %s2461_s24, %s2461_s24, %s2462_s25  }
  0x23   :  { %s2463_s10 = smov [#allocation7]   ;;  %s2409_s14 = scalar_lea.hbm %s2769_s2, 512 }
  0x24   :  { %s40_s11 = sshll.u32 %s2463_s10, 4  ;;  %p2410_p2 = scmp.ne.s32.totalorder %s2769_s2, %s2409_s14  ;;  %s41_s11 = int_to_ptr.vmem [resolvable:$true] %s40_s11 }
  0x25   :  { %p2413_p3 = scmp.lt.u32.totalorder %s2409_s14, %s2769_s2 }
  0x27   :  { %p2415_p4 = pnand %p2413_p3, %p2410_p2 }
  0x29   :  { %2418 = shalt.err (!%p2415_p4)
}
  0x2a   :  { %s2419_s20 = scalar_lea.vmem %s41_s11, 512  ;;  %p2424_p6 = scmp.lt.s32.totalorder %s41_s11, %s41_s11 }
  0x2b   :  { %p2420_p5 = scmp.ne.s32.totalorder %s41_s11, %s2419_s20  ;;  %p2425_p7 = scmp.lt.s32.totalorder %s2419_s20, %s2419_s20 }
  0x2d   :  { %p2426_p8 = por %p2425_p7, %p2424_p6 }
  0x2f   :  { %p2427_p9 = pnand %p2426_p8, %p2420_p5 }
  0x31   :  { %2430 = shalt.err (!%p2427_p9)
}
  0x32   :  { %46 = dma.hbm_to_vmem [thread:$0]  %s2769_s2, 512, %s41_s11, [#allocation6], %s2461_s24, %s2461_s24, %s2462_s25  }
  0x33   :  { %2453 = dma.done.wait [#allocation3], 512  }
  0x34   :  { %2454 = vsyncadd [#allocation3], 4294966784 }
  0x35   :  { %2455 = dma.done.wait [#allocation6], 1024  }
  0x36   :  { %2456 = vsyncadd [#allocation6], 4294966272  ;;  %v64_v0 = vld [vmem:[#allocation5] sm:$0xff]  ;;  %v66_v1 = vld [vmem:[#allocation5 + $0x10] sm:$0xff]  ;;  %vm100_vm0 = vcmask 64512   ;;  %v2464_v62 = vmov 0.0|0.0  }
  0x37   :  { %68 = vxpose.xlu0.b32.start.end [1/1] (short) %v64_v0, 128  ;;  %519 = vxpose.xlu1.b32.start.end [1/1] (short) %v66_v1, 128  ;;  %v56_v2 = vld [vmem:[#allocation2] sm:$0xff]  ;;  %v65_v4 = vld [vmem:[#allocation5 + $0x8] sm:$0xff]  ;;  %v67_v5 = vld [vmem:[#allocation5 + $0x18] sm:$0xff]  ;;  %vm2465_vm1 = vmmov 0   ;;  %v2466_v63 = vmov 0.0   ;;  %s2467_s2 = smov [#allocation8]  }
  0x38   :  { %v60_v3 = vmul.f32 0.35355338, %v56_v2  ;;  %v58_v6 = vld [vmem:[#allocation2 + $0x10] sm:$0xff]  ;;  %v57_v8 = vld [vmem:[#allocation2 + $0x8] sm:$0xff]  ;;  %v59_v10 = vld [vmem:[#allocation2 + $0x18] sm:$0xff]  ;;  %s1771_s21 = sshll.u32 %s2467_s2, 4  ;;  %s1772_s21 = int_to_ptr.vmem [resolvable:$true] %s1771_s21 }
  0x39   :  { %v62_v7 = vmul.f32 0.35355338, %v58_v6  ;;  %v61_v9 = vmul.f32 0.35355338, %v57_v8  ;;  %v63_v11 = vmul.f32 0.35355338, %v59_v10  ;;  %p2436_p11 = scmp.lt.s32.totalorder %s1772_s21, %s1772_s21 }
  0x3a   :  { %1984 = vmatprep.subr.mxu0 %v60_v3  ;;  %s2431_s22 = scalar_lea.vmem %s1772_s21, 512 }
  0x3b   :  { %1985 = vmatpush3.msra.mxu0 %v60_v3  ;;  %2010 = vmatprep.subr.mxu1 %v61_v9  ;;  %p2432_p10 = scmp.ne.s32.totalorder %s1772_s21, %s2431_s22  ;;  %p2437_p12 = scmp.lt.s32.totalorder %s2431_s22, %s2431_s22 }
  0x3c   :  { %2036 = vmatprep.subr.mxu0 %v62_v7  ;;  %2011 = vmatpush3.msra.mxu1 %v61_v9 }
  0x3d   :  { %2062 = vmatprep.subr.mxu1 %v63_v11  ;;  %p2438_p13 = por %p2437_p12, %p2436_p11 }
  0x3f   :  { %p2439_p0 = pnand %p2438_p13, %p2432_p10 }
  0x74   :  { %294 = vxpose.xlu0.b32.start.end [1/1] (short) %v65_v4, 128  ;;  %744 = vxpose.xlu1.b32.start.end [1/1] (short) %v67_v5, 128 }
  0xb7   :  { %v84_v12 = vpop.trf.xlu0  ;;  %v535_v13 = vpop.trf.xlu1 }
  0xb8   :  { %1986 = vmatprep.mubr.msk.f32.mxu0 %vm100_vm0, %v84_v12 }
  0xbb   :  { %v85_v14 = vpop.trf.xlu0  ;;  %v536_v15 = vpop.trf.xlu1 }
  0xbc   :  { %1987 = vmatmul.mubr.msk.f32.vlgmr.msra.gmra.mrb[0].mxu0 %vm100_vm0, %v85_v14 }
  0xbd   :  { %2037 = vmatpush3.msra.mxu0 %v62_v7 }
  0xbe   :  { %2228 = vmatprep.subr.bf16.mxu0 %v2464_v62 }
  0xbf   :  { %v86_v16 = vpop.trf.xlu0  ;;  %v537_v18 = vpop.trf.xlu1 }
  0xc0   :  { %1989 = vmatprep.mubr.msk.f32.mxu0 %vm100_vm0, %v86_v16 }
  0xc3   :  { %v87_v17 = vpop.trf.xlu0  ;;  %v538_v20 = vpop.trf.xlu1 }
  0xc4   :  { %1990 = vmatmul.mubr.msk.f32.gmra.mrb[2].mxu0 %vm100_vm0, %v87_v17 }
  0xc7   :  { %v88_v19 = vpop.trf.xlu0  ;;  %v539_v23 = vpop.trf.xlu1 }
  0xc8   :  { %1992 = vmatprep.mubr.msk.f32.mxu0 %vm100_vm0, %v88_v19 }
  0xcb   :  { %v89_v21 = vpop.trf.xlu0  ;;  %v540_v25 = vpop.trf.xlu1 }
  0xcc   :  { %1993 = vmatmul.mubr.msk.f32.gmra.mrb[4].mxu0 %vm100_vm0, %v89_v21 }
  0xcf   :  { %v90_v22 = vpop.trf.xlu0  ;;  %v541_v28 = vpop.trf.xlu1 }
  0xd0   :  { %1995 = vmatprep.mubr.msk.f32.mxu0 %vm100_vm0, %v90_v22 }
  0xd3   :  { %v91_v24 = vpop.trf.xlu0  ;;  %v542_v30 = vpop.trf.xlu1 }
  0xd4   :  { %1996 = vmatmul.mubr.msk.f32.gmra.mrb[6].mxu0 %vm100_vm0, %v91_v24 }
  0xd7   :  { %v92_v26 = vpop.trf.xlu0  ;;  %v543_v33 = vpop.trf.xlu1 }
  0xd8   :  { %1998 = vmatprep.mubr.msk.f32.mxu0 %vm100_vm0, %v92_v26 }
  0xdb   :  { %v93_v27 = vpop.trf.xlu0  ;;  %v544_v35 = vpop.trf.xlu1 }
  0xdc   :  { %1999 = vmatmul.mubr.msk.f32.gmra.mrb[8].mxu0 %vm100_vm0, %v93_v27 }
  0xdf   :  { %v94_v29 = vpop.trf.xlu0  ;;  %v545_v38 = vpop.trf.xlu1 }
  0xe0   :  { %2001 = vmatprep.mubr.msk.f32.mxu0 %vm100_vm0, %v94_v29 }
  0xe3   :  { %v95_v31 = vpop.trf.xlu0  ;;  %v546_v40 = vpop.trf.xlu1 }
  0xe4   :  { %2002 = vmatmul.mubr.msk.f32.gmra.mrb[10].mxu0 %vm100_vm0, %v95_v31 }
  0xe7   :  { %v96_v32 = vpop.trf.xlu0  ;;  %v547_v43 = vpop.trf.xlu1 }
  0xe8   :  { %2004 = vmatprep.mubr.msk.f32.mxu0 %vm100_vm0, %v96_v32 }
  0xeb   :  { %v97_v34 = vpop.trf.xlu0  ;;  %v548_v45 = vpop.trf.xlu1 }
  0xec   :  { %2005 = vmatmul.mubr.msk.f32.gmra.mrb[12].mxu0 %vm100_vm0, %v97_v34 }
  0xef   :  { %v98_v36 = vpop.trf.xlu0  ;;  %v549_v48 = vpop.trf.xlu1 }
  0xf0   :  { %2007 = vmatprep.mubr.msk.f32.mxu0 %vm100_vm0, %v98_v36 }
  0xf3   :  { %v99_v37 = vpop.trf.xlu0  ;;  %v550_v50 = vpop.trf.xlu1 }
  0xf4   :  { %2008 = vmatmul.mubr.msk.f32.gmra.mrb[14].mxu0 %vm100_vm0, %v99_v37 }
  0xf5   :  { %2038 = vmatprep.mubr.msk.f32.mxu0 %vm100_vm0, %v535_v13 }
  0xf7   :  { %v310_v39 = vpop.trf.xlu0  ;;  %v760_v59 = vpop.trf.xlu1 }
  0xf8   :  { %2012 = vmatprep.mubr.msk.f32.mxu1 %vm100_vm0, %v310_v39  ;;  %2039 = vmatmul.mubr.msk.f32.vlgmr.msra.gmra.mrb[16].mxu0 %vm100_vm0, %v536_v15 }
  0xf9   :  { %2041 = vmatprep.mubr.msk.f32.mxu0 %vm100_vm0, %v537_v18 }
  0xfb   :  { %v311_v41 = vpop.trf.xlu0  ;;  %v761_v61 = vpop.trf.xlu1 }
  0xfc   :  { %2013 = vmatmul.mubr.msk.f32.vlgmr.msra.gmra.mrb[0].mxu1 %vm100_vm0, %v311_v41  ;;  %2042 = vmatmul.mubr.msk.f32.gmra.mrb[18].mxu0 %vm100_vm0, %v538_v20 }
  0xfd   :  { %2044 = vmatprep.mubr.msk.f32.mxu0 %vm100_vm0, %v539_v23  ;;  %2063 = vmatpush3.msra.mxu1 %v63_v11 }
  0xfe   :  { %2252 = vmatprep.subr.bf16.mxu1 %v2464_v62 }
  0xff   :  { %v312_v42 = vpop.trf.xlu0  ;;  %v762_v0 = vpop.trf.xlu1 }
 0x100   :  { %2015 = vmatprep.mubr.msk.f32.mxu1 %vm100_vm0, %v312_v42  ;;  %2045 = vmatmul.mubr.msk.f32.gmra.mrb[20].mxu0 %vm100_vm0, %v540_v25 }
 0x101   :  { %2047 = vmatprep.mubr.msk.f32.mxu0 %vm100_vm0, %v541_v28 }
 0x103   :  { %v313_v44 = vpop.trf.xlu0  ;;  %v763_v1 = vpop.trf.xlu1 }
 0x104   :  { %2016 = vmatmul.mubr.msk.f32.gmra.mrb[2].mxu1 %vm100_vm0, %v313_v44  ;;  %2048 = vmatmul.mubr.msk.f32.gmra.mrb[22].mxu0 %vm100_vm0, %v542_v30 }
 0x105   :  { %2050 = vmatprep.mubr.msk.f32.mxu0 %vm100_vm0, %v543_v33 }
 0x107   :  { %v314_v46 = vpop.trf.xlu0  ;;  %v764_v2 = vpop.trf.xlu1 }
 0x108   :  { %2018 = vmatprep.mubr.msk.f32.mxu1 %vm100_vm0, %v314_v46  ;;  %2051 = vmatmul.mubr.msk.f32.gmra.mrb[24].mxu0 %vm100_vm0, %v544_v35 }
 0x109   :  { %2053 = vmatprep.mubr.msk.f32.mxu0 %vm100_vm0, %v545_v38 }
 0x10b   :  { %v315_v47 = vpop.trf.xlu0  ;;  %v765_v3 = vpop.trf.xlu1 }
 0x10c   :  { %2019 = vmatmul.mubr.msk.f32.gmra.mrb[4].mxu1 %vm100_vm0, %v315_v47  ;;  %2054 = vmatmul.mubr.msk.f32.gmra.mrb[26].mxu0 %vm100_vm0, %v546_v40 }
 0x10d   :  { %2056 = vmatprep.mubr.msk.f32.mxu0 %vm100_vm0, %v547_v43 }
 0x10f   :  { %v316_v49 = vpop.trf.xlu0  ;;  %v766_v4 = vpop.trf.xlu1 }
 0x110   :  { %2021 = vmatprep.mubr.msk.f32.mxu1 %vm100_vm0, %v316_v49  ;;  %2057 = vmatmul.mubr.msk.f32.gmra.mrb[28].mxu0 %vm100_vm0, %v548_v45 }
 0x111   :  { %2059 = vmatprep.mubr.msk.f32.mxu0 %vm100_vm0, %v549_v48 }
 0x113   :  { %v317_v51 = vpop.trf.xlu0  ;;  %v767_v5 = vpop.trf.xlu1 }
 0x114   :  { %2022 = vmatmul.mubr.msk.f32.gmra.mrb[6].mxu1 %vm100_vm0, %v317_v51  ;;  %2060 = vmatmul.mubr.msk.f32.gmra.mrb[30].mxu0 %vm100_vm0, %v550_v50 }
 0x115   :  { %2120 = vmatprep.mubr.msk.f32.mxu0 %vm2465_vm1, %v2466_v63 }
 0x117   :  { %v318_v52 = vpop.trf.xlu0  ;;  %v768_v6 = vpop.trf.xlu1 }
 0x118   :  { %2024 = vmatprep.mubr.msk.f32.mxu1 %vm100_vm0, %v318_v52 }
 0x11b   :  { %v319_v53 = vpop.trf.xlu0  ;;  %v769_v9 = vpop.trf.xlu1 }
 0x11c   :  { %2025 = vmatmul.mubr.msk.f32.gmra.mrb[8].mxu1 %vm100_vm0, %v319_v53 }
 0x11f   :  { %v320_v54 = vpop.trf.xlu0  ;;  %v770_v12 = vpop.trf.xlu1 }
 0x120   :  { %2027 = vmatprep.mubr.msk.f32.mxu1 %vm100_vm0, %v320_v54 }
 0x123   :  { %v321_v55 = vpop.trf.xlu0  ;;  %v771_v17 = vpop.trf.xlu1 }
 0x124   :  { %2028 = vmatmul.mubr.msk.f32.gmra.mrb[10].mxu1 %vm100_vm0, %v321_v55 }
 0x127   :  { %v322_v56 = vpop.trf.xlu0  ;;  %v772_v20 = vpop.trf.xlu1 }
 0x128   :  { %2030 = vmatprep.mubr.msk.f32.mxu1 %vm100_vm0, %v322_v56 }
 0x12b   :  { %v323_v57 = vpop.trf.xlu0  ;;  %v773_v25 = vpop.trf.xlu1 }
 0x12c   :  { %2031 = vmatmul.mubr.msk.f32.gmra.mrb[12].mxu1 %vm100_vm0, %v323_v57 }
 0x12f   :  { %v324_v58 = vpop.trf.xlu0  ;;  %v774_v28 = vpop.trf.xlu1 }
 0x130   :  { %2033 = vmatprep.mubr.msk.f32.mxu1 %vm100_vm0, %v324_v58 }
 0x133   :  { %v325_v60 = vpop.trf.xlu0  ;;  %v775_v33 = vpop.trf.xlu1 }
 0x134   :  { %2034 = vmatmul.mubr.msk.f32.gmra.mrb[14].mxu1 %vm100_vm0, %v325_v60 }
 0x135   :  { %2064 = vmatprep.mubr.msk.f32.mxu1 %vm100_vm0, %v760_v59 }
 0x138   :  { %2065 = vmatmul.mubr.msk.f32.vlgmr.msra.gmra.mrb[16].mxu1 %vm100_vm0, %v761_v61 }
 0x139   :  { %2067 = vmatprep.mubr.msk.f32.mxu1 %vm100_vm0, %v762_v0 }
 0x13c   :  { %2068 = vmatmul.mubr.msk.f32.gmra.mrb[18].mxu1 %vm100_vm0, %v763_v1 }
 0x13d   :  { %2070 = vmatprep.mubr.msk.f32.mxu1 %vm100_vm0, %v764_v2 }
 0x140   :  { %2071 = vmatmul.mubr.msk.f32.gmra.mrb[20].mxu1 %vm100_vm0, %v765_v3 }
 0x141   :  { %2073 = vmatprep.mubr.msk.f32.mxu1 %vm100_vm0, %v766_v4 }
 0x144   :  { %2074 = vmatmul.mubr.msk.f32.gmra.mrb[22].mxu1 %vm100_vm0, %v767_v5 }
 0x145   :  { %2076 = vmatprep.mubr.msk.f32.mxu1 %vm100_vm0, %v768_v6 }
 0x148   :  { %2077 = vmatmul.mubr.msk.f32.gmra.mrb[24].mxu1 %vm100_vm0, %v769_v9 }
 0x149   :  { %2079 = vmatprep.mubr.msk.f32.mxu1 %vm100_vm0, %v770_v12 }
 0x14c   :  { %2080 = vmatmul.mubr.msk.f32.gmra.mrb[26].mxu1 %vm100_vm0, %v771_v17 }
 0x14d   :  { %2082 = vmatprep.mubr.msk.f32.mxu1 %vm100_vm0, %v772_v20 }
 0x150   :  { %2083 = vmatmul.mubr.msk.f32.gmra.mrb[28].mxu1 %vm100_vm0, %v773_v25 }
 0x151   :  { %2085 = vmatprep.mubr.msk.f32.mxu1 %vm100_vm0, %v774_v28 }
 0x154   :  { %2086 = vmatmul.mubr.msk.f32.gmra.mrb[30].mxu1 %vm100_vm0, %v775_v33 }
 0x155   :  { %2155 = vmatprep.mubr.msk.f32.mxu1 %vm2465_vm1, %v2466_v63 }
 0x18f   :  { %v1988_v7 = vpop.f32.mrb[0].mxu0 }
 0x190   :  { %v215_v8 = vpop.f32.mrb[1].mxu0 }
 0x191   :  { %v1098_v10 = vmax.f32 %v215_v8, %v1988_v7 }
 0x193   :  { %v1099_v11 = vmax.f32 %v1098_v10, -1e+30 }
 0x195   :  { %v1100_v13 = vmax.f32 %v1099_v11, -1e+30 }
 0x197   :  { %v1101_v14 = vmax.f32 %v1100_v13, -1e+30  ;;  %v1991_v15 = vpop.f32.mrb[2].mxu0 }
 0x198   :  { %v225_v16 = vpop.f32.mrb[3].mxu0 }
 0x199   :  { %v1102_v18 = vmax.f32 %v1101_v14, -1e+30 }
 0x19b   :  { %v1103_v19 = vmax.f32 %v1102_v18, -1e+30 }
 0x19d   :  { %v1104_v21 = vmax.f32 %v1103_v19, -1e+30 }
 0x19f   :  { %v1105_v22 = vmax.f32 %v1104_v21, -1e+30  ;;  %v1994_v23 = vpop.f32.mrb[4].mxu0 }
 0x1a0   :  { %v235_v24 = vpop.f32.mrb[5].mxu0 }
 0x1a1   :  { %v1106_v26 = vmax.f32 %v1105_v22, -1e+30 }
 0x1a3   :  { %v1107_v27 = vmax.f32 %v1106_v26, -1e+30 }
 0x1a5   :  { %v1108_v29 = vmax.f32 %v1107_v27, -1e+30 }
 0x1a7   :  { %v1109_v30 = vmax.f32 %v1108_v29, -1e+30  ;;  %v1997_v31 = vpop.f32.mrb[6].mxu0 }
 0x1a8   :  { %v245_v32 = vpop.f32.mrb[7].mxu0 }
 0x1a9   :  { %v1110_v34 = vmax.f32 %v1109_v30, -1e+30 }
 0x1ab   :  { %v1111_v35 = vmax.f32 %v1110_v34, -1e+30 }
 0x1ad   :  { %v1112_v36 = vmax.f32 %v1111_v35, -1e+30 }
 0x1af   :  { %v1113_v37 = vrot.slane %v1112_v36, 4  ;;  %v2000_v38 = vpop.f32.mrb[8].mxu0 }
 0x1b0   :  { %v255_v39 = vpop.f32.mrb[9].mxu0 }
 0x1b1   :  { %v1114_v40 = vmax.f32 %v1112_v36, %v1113_v37 }
 0x1b3   :  { %v1115_v41 = vrot.slane %v1114_v40, 2 }
 0x1b5   :  { %v1116_v42 = vmax.f32 %v1114_v40, %v1115_v41 }
 0x1b7   :  { %v1117_v43 = vrot.slane %v1116_v42, 1  ;;  %v2003_v44 = vpop.f32.mrb[10].mxu0 }
 0x1b8   :  { %v265_v45 = vpop.f32.mrb[11].mxu0 }
 0x1b9   :  { %v1118_v46 = vmax.f32 %v1116_v42, %v1117_v43 }
 0x1bb   :  { %v1182_v47 = vsub.f32 %v215_v8, %v1118_v46  ;;  %v1183_v48 = vsub.f32 %v1988_v7, %v1118_v46  ;;  %v1184_v49 = vsub.f32 -1e+30, %v1118_v46 }
 0x1bd   :  { %v1246_v50 = vmul.f32 1.442695, %v1182_v47  ;;  %v1248_v51 = vmul.f32 1.442695, %v1183_v48  ;;  %v1250_v52 = vmul.f32 1.442695, %v1184_v49 }
 0x1bf   :  { %2333 = vpow2.f32 %v1246_v50  ;;  %v2006_v53 = vpop.f32.mrb[12].mxu0 }
 0x1c0   :  { %2335 = vpow2.f32 %v1248_v51  ;;  %v275_v54 = vpop.f32.mrb[13].mxu0 }
 0x1c1   :  { %2337 = vpow2.f32 %v1250_v52 }
 0x1c7   :  { %v2009_v55 = vpop.f32.mrb[14].mxu0 }
 0x1c8   :  { %v285_v56 = vpop.f32.mrb[15].mxu0 }
 0x1c9   :  { %v2334_v57 = vpop.eup %2333 }
 0x1ca   :  { %v2336_v58 = vpop.eup %2335 }
 0x1cb   :  { %v1374_v59 = vadd.f32 %v2336_v58, %v2334_v57  ;;  %v2610_v60 = vpop.f32.mrb[16].mxu0  ;;  %v2229_v61 = vpack.c.bf16 %v2336_v58, %v2334_v57  ;;  %v2612_v0 = vpop.eup %2337 }
 0x1cc   :  { %v2614_v1 = vpop.f32.mrb[17].mxu0  ;;  %v2625_v7 = vpack.c.bf16 %v2612_v0, %v2612_v0 }
 0x1cd   :  { %v1375_v2 = vadd.f32 %v2612_v0, %v1374_v59  ;;  %v1140_v3 = vmax.f32 %v2614_v1, %v2610_v60  ;;  %2230 = vmatpush3.bf16.msra.mxu0 %v2229_v61 }
 0x1ce   :  { %2231 = vmatprep.subr.bf16.mxu0 %v2464_v62 }
 0x1cf   :  { %v1376_v4 = vadd.f32 %v2612_v0, %v1375_v2  ;;  %v1141_v5 = vmax.f32 %v1140_v3, -1e+30  ;;  %v2621_v6 = vpop.f32.mrb[0].mxu1  ;;  %v2043_v8 = vpop.f32.mrb[18].mxu0 }
 0x1d0   :  { %v2627_v9 = vpop.f32.mrb[1].mxu1  ;;  %v675_v10 = vpop.f32.mrb[19].mxu0 }
 0x1d1   :  { %v1377_v11 = vadd.f32 %v2612_v0, %v1376_v4  ;;  %v1142_v12 = vmax.f32 %v1141_v5, -1e+30  ;;  %v1119_v13 = vmax.f32 %v2627_v9, %v2621_v6  ;;  %2233 = vmatpush3.bf16.msra.mxu0 %v2625_v7 }
 0x1d2   :  { %2234 = vmatprep.subr.bf16.mxu0 %v2464_v62 }
 0x1d3   :  { %v1378_v14 = vadd.f32 %v2612_v0, %v1377_v11  ;;  %v1143_v15 = vmax.f32 %v1142_v12, -1e+30  ;;  %v1120_v16 = vmax.f32 %v1119_v13, -1e+30  ;;  %v2046_v17 = vpop.f32.mrb[20].mxu0  ;;  %v1458_v11 = vld [vmem:[#allocation7] sm:$0xff] }
 0x1d4   :  { %v685_v18 = vpop.f32.mrb[21].mxu0 }
 0x1d5   :  { %v1379_v19 = vadd.f32 %v2612_v0, %v1378_v14  ;;  %v1144_v20 = vmax.f32 %v1143_v15, -1e+30  ;;  %v1121_v21 = vmax.f32 %v1120_v16, -1e+30  ;;  %2236 = vmatpush3.bf16.msra.mxu0 %v2625_v7 }
 0x1d6   :  { %2237 = vmatprep.subr.bf16.mxu0 %v2464_v62 }
 0x1d7   :  { %v1380_v22 = vadd.f32 %v2612_v0, %v1379_v19  ;;  %v1145_v23 = vmax.f32 %v1144_v20, -1e+30  ;;  %v1122_v24 = vmax.f32 %v1121_v21, -1e+30  ;;  %v2017_v25 = vpop.f32.mrb[2].mxu1  ;;  %v2049_v26 = vpop.f32.mrb[22].mxu0 }
 0x1d8   :  { %v450_v27 = vpop.f32.mrb[3].mxu1  ;;  %v695_v28 = vpop.f32.mrb[23].mxu0 }
 0x1d9   :  { %v1146_v29 = vmax.f32 %v1145_v23, -1e+30  ;;  %v1123_v30 = vmax.f32 %v1122_v24, -1e+30  ;;  %2239 = vmatpush3.bf16.msra.mxu0 %v2625_v7  ;;  %v1381_v31 = vadd.f32 %v2612_v0, %v1380_v22 }
 0x1da   :  { %2240 = vmatprep.subr.bf16.mxu0 %v2464_v62 }
 0x1db   :  { %v1147_v32 = vmax.f32 %v1146_v29, -1e+30  ;;  %v1124_v33 = vmax.f32 %v1123_v30, -1e+30  ;;  %v2052_v34 = vpop.f32.mrb[24].mxu0  ;;  %v1382_v35 = vadd.f32 %v2612_v0, %v1381_v31 }
 0x1dc   :  { %v705_v36 = vpop.f32.mrb[25].mxu0 }
 0x1dd   :  { %v1148_v37 = vmax.f32 %v1147_v32, -1e+30  ;;  %v1125_v38 = vmax.f32 %v1124_v33, -1e+30  ;;  %2242 = vmatpush3.bf16.msra.mxu0 %v2625_v7  ;;  %v1383_v39 = vadd.f32 %v2612_v0, %v1382_v35 }
 0x1de   :  { %2243 = vmatprep.subr.bf16.mxu0 %v2464_v62 }
 0x1df   :  { %v1149_v40 = vmax.f32 %v1148_v37, -1e+30  ;;  %v1126_v41 = vmax.f32 %v1125_v38, -1e+30  ;;  %v2020_v42 = vpop.f32.mrb[4].mxu1  ;;  %v2055_v43 = vpop.f32.mrb[26].mxu0  ;;  %v1384_v44 = vadd.f32 %v2612_v0, %v1383_v39 }
 0x1e0   :  { %v460_v45 = vpop.f32.mrb[5].mxu1  ;;  %v715_v46 = vpop.f32.mrb[27].mxu0 }
 0x1e1   :  { %v1150_v47 = vmax.f32 %v1149_v40, -1e+30  ;;  %v1127_v48 = vmax.f32 %v1126_v41, -1e+30  ;;  %2245 = vmatpush3.bf16.msra.mxu0 %v2625_v7  ;;  %v1385_v49 = vadd.f32 %v2612_v0, %v1384_v44 }
 0x1e2   :  { %2246 = vmatprep.subr.bf16.mxu0 %v2464_v62 }
 0x1e3   :  { %v1151_v50 = vmax.f32 %v1150_v47, -1e+30  ;;  %v1128_v51 = vmax.f32 %v1127_v48, -1e+30  ;;  %v2058_v52 = vpop.f32.mrb[28].mxu0  ;;  %v1386_v53 = vadd.f32 %v2612_v0, %v1385_v49 }
 0x1e4   :  { %v725_v54 = vpop.f32.mrb[29].mxu0 }
 0x1e5   :  { %v1152_v55 = vmax.f32 %v1151_v50, -1e+30  ;;  %v1129_v56 = vmax.f32 %v1128_v51, -1e+30  ;;  %2248 = vmatpush3.bf16.msra.mxu0 %v2625_v7  ;;  %v1387_v57 = vadd.f32 %v2612_v0, %v1386_v53 }
 0x1e6   :  { %2249 = vmatprep.subr.bf16.mxu0 %v2464_v62 }
 0x1e7   :  { %v1153_v58 = vmax.f32 %v1152_v55, -1e+30  ;;  %v1130_v59 = vmax.f32 %v1129_v56, -1e+30  ;;  %v2023_v61 = vpop.f32.mrb[6].mxu1  ;;  %v2061_v2 = vpop.f32.mrb[30].mxu0  ;;  %v2655_v3 = vadd.f32 %v2612_v0, %v1387_v57 }
 0x1e8   :  { %v470_v4 = vpop.f32.mrb[7].mxu1  ;;  %v735_v5 = vpop.f32.mrb[31].mxu0 }
 0x1e9   :  { %v1154_v8 = vmax.f32 %v1153_v58, -1e+30  ;;  %v1131_v10 = vmax.f32 %v1130_v59, -1e+30  ;;  %2251 = vmatpush3.bf16.msra.mxu0 %v2625_v7 }
 0x1ea   :  { %2276 = vmatprep.subr.bf16.mxu0 %v2464_v62 }
 0x1eb   :  { %v1155_v12 = vrot.slane %v1154_v8, 4  ;;  %v1132_v13 = vmax.f32 %v1131_v10, -1e+30 }
 0x1ec   :  { %2121 = vmatmul.mubr.f32.vlgmr.msra.gmra.mrb[32].mxu0 %v1458_v11 }
 0x1ed   :  { %v1156_v14 = vmax.f32 %v1154_v8, %v1155_v12  ;;  %v1133_v15 = vmax.f32 %v1132_v13, -1e+30  ;;  %2190 = vmatprep.mubr.msk.f32.mxu0 %vm2465_vm1, %v2466_v63 }
 0x1ef   :  { %v1157_v16 = vrot.slane %v1156_v14, 2  ;;  %v1134_v0 = vrot.slane %v1133_v15, 4  ;;  %v2026_v17 = vpop.f32.mrb[8].mxu1 }
 0x1f0   :  { %v480_v18 = vpop.f32.mrb[9].mxu1 }
 0x1f1   :  { %v1158_v19 = vmax.f32 %v1156_v14, %v1157_v16  ;;  %v1135_v20 = vmax.f32 %v1133_v15, %v1134_v0 }
 0x1f3   :  { %v1159_v21 = vrot.slane %v1158_v19, 1  ;;  %v1136_v22 = vrot.slane %v1135_v20, 2 }
 0x1f5   :  { %v1160_v7 = vmax.f32 %v1158_v19, %v1159_v21  ;;  %v1137_v23 = vmax.f32 %v1135_v20, %v1136_v22 }
 0x1f7   :  { %v1214_v24 = vsub.f32 %v2614_v1, %v1160_v7  ;;  %v1215_v25 = vsub.f32 %v2610_v60, %v1160_v7  ;;  %v1216_v26 = vsub.f32 -1e+30, %v1160_v7  ;;  %v1138_v27 = vrot.slane %v1137_v23, 1  ;;  %v2029_v28 = vpop.f32.mrb[10].mxu1 }
 0x1f8   :  { %v490_v29 = vpop.f32.mrb[11].mxu1 }
 0x1f9   :  { %v1310_v30 = vmul.f32 1.442695, %v1214_v24  ;;  %v1312_v31 = vmul.f32 1.442695, %v1215_v25  ;;  %v1139_v32 = vmax.f32 %v1137_v23, %v1138_v27  ;;  %v1314_v33 = vmul.f32 1.442695, %v1216_v26 }
 0x1fb   :  { %2339 = vpow2.f32 %v1310_v30  ;;  %v1198_v34 = vsub.f32 %v2627_v9, %v1139_v32  ;;  %v1199_v35 = vsub.f32 %v2621_v6, %v1139_v32  ;;  %v1200_v36 = vsub.f32 -1e+30, %v1139_v32 }
 0x1fc   :  { %2341 = vpow2.f32 %v1312_v31 }
 0x1fd   :  { %v1278_v37 = vmul.f32 1.442695, %v1198_v34  ;;  %v1280_v38 = vmul.f32 1.442695, %v1199_v35  ;;  %2343 = vpow2.f32 %v1314_v33  ;;  %v1282_v1 = vmul.f32 1.442695, %v1200_v36 }
 0x1fe   :  { %v1460_v36 = vld [vmem:[#allocation7 + $0x10] sm:$0xff] }
 0x1ff   :  { %2345 = vpow2.f32 %v1278_v37  ;;  %v2032_v60 = vpop.f32.mrb[12].mxu1 }
 0x200   :  { %2347 = vpow2.f32 %v1280_v38  ;;  %v500_v39 = vpop.f32.mrb[13].mxu1 }
 0x201   :  { %2349 = vpow2.f32 %v1282_v1  ;;  %v1459_v39 = vld [vmem:[#allocation7 + $0x8] sm:$0xff] }
 0x205   :  { %v2340_v40 = vpop.eup %2339 }
 0x206   :  { %v2342_v41 = vpop.eup %2341 }
 0x207   :  { %v1416_v42 = vadd.f32 %v2342_v41, %v2340_v40  ;;  %v2035_v43 = vpop.f32.mrb[14].mxu1  ;;  %v2277_v44 = vpack.c.bf16 %v2342_v41, %v2340_v40  ;;  %v2665_v45 = vpop.eup %2343 }
 0x208   :  { %v510_v9 = vpop.f32.mrb[15].mxu1  ;;  %v2674_v52 = vpack.c.bf16 %v2665_v45, %v2665_v45 }
 0x209   :  { %v2346_v6 = vpop.eup %2345  ;;  %v1417_v46 = vadd.f32 %v2665_v45, %v1416_v42  ;;  %2278 = vmatpush3.bf16.msra.mxu0 %v2277_v44 }
 0x20a   :  { %v2348_v47 = vpop.eup %2347  ;;  %2279 = vmatprep.subr.bf16.mxu0 %v2464_v62 }
 0x20b   :  { %v1418_v48 = vadd.f32 %v2665_v45, %v1417_v46  ;;  %v1395_v49 = vadd.f32 %v2348_v47, %v2346_v6  ;;  %v2670_v50 = vpop.f32.mrb[16].mxu1  ;;  %v2253_v51 = vpack.c.bf16 %v2348_v47, %v2346_v6  ;;  %v2676_v53 = vpop.eup %2349 }
 0x20c   :  { %v2678_v54 = vpop.f32.mrb[17].mxu1  ;;  %v2256_v2 = vpack.c.bf16 %v2676_v53, %v2676_v53 }
 0x20d   :  { %v1419_v55 = vadd.f32 %v2665_v45, %v1418_v48  ;;  %v1396_v56 = vadd.f32 %v2676_v53, %v1395_v49  ;;  %v1161_v57 = vmax.f32 %v2678_v54, %v2670_v50  ;;  %2254 = vmatpush3.bf16.msra.mxu1 %v2253_v51  ;;  %2281 = vmatpush3.bf16.msra.mxu0 %v2674_v52 }
 0x20e   :  { %2255 = vmatprep.subr.bf16.mxu1 %v2464_v62  ;;  %2282 = vmatprep.subr.bf16.mxu0 %v2464_v62 }
 0x20f   :  { %v1420_v58 = vadd.f32 %v2665_v45, %v1419_v55  ;;  %v1397_v59 = vadd.f32 %v2676_v53, %v1396_v56  ;;  %v1162_v61 = vmax.f32 %v1161_v57, -1e+30 }
 0x211   :  { %v1421_v4 = vadd.f32 %v2665_v45, %v1420_v58  ;;  %v1398_v5 = vadd.f32 %v2676_v53, %v1397_v59  ;;  %v1163_v8 = vmax.f32 %v1162_v61, -1e+30  ;;  %2257 = vmatpush3.bf16.msra.mxu1 %v2256_v2  ;;  %2284 = vmatpush3.bf16.msra.mxu0 %v2674_v52  ;;  %v2069_v58 = vpop.f32.mrb[18].mxu1 }
 0x212   :  { %2258 = vmatprep.subr.bf16.mxu1 %v2464_v62  ;;  %2285 = vmatprep.subr.bf16.mxu0 %v2464_v62  ;;  %v900_v59 = vpop.f32.mrb[19].mxu1 }
 0x213   :  { %v1422_v10 = vadd.f32 %v2665_v45, %v1421_v4  ;;  %v1399_v11 = vadd.f32 %v2676_v53, %v1398_v5  ;;  %v1164_v12 = vmax.f32 %v1163_v8, -1e+30  ;;  %v2072_v5 = vpop.f32.mrb[20].mxu1 }
 0x214   :  { %v910_v8 = vpop.f32.mrb[21].mxu1 }
 0x215   :  { %v1400_v13 = vadd.f32 %v2676_v53, %v1399_v11  ;;  %v1165_v14 = vmax.f32 %v1164_v12, -1e+30  ;;  %2260 = vmatpush3.bf16.msra.mxu1 %v2256_v2  ;;  %2287 = vmatpush3.bf16.msra.mxu0 %v2674_v52  ;;  %v1423_v15 = vadd.f32 %v2665_v45, %v1422_v10 }
 0x216   :  { %2261 = vmatprep.subr.bf16.mxu1 %v2464_v62  ;;  %2288 = vmatprep.subr.bf16.mxu0 %v2464_v62 }
 0x217   :  { %v1401_v16 = vadd.f32 %v2676_v53, %v1400_v13  ;;  %v1166_v0 = vmax.f32 %v1165_v14, -1e+30  ;;  %v1424_v17 = vadd.f32 %v2665_v45, %v1423_v15  ;;  %v2075_v14 = vpop.f32.mrb[22].mxu1 }
 0x218   :  { %v920_v15 = vpop.f32.mrb[23].mxu1 }
 0x219   :  { %v1167_v18 = vmax.f32 %v1166_v0, -1e+30  ;;  %2263 = vmatpush3.bf16.msra.mxu1 %v2256_v2  ;;  %2290 = vmatpush3.bf16.msra.mxu0 %v2674_v52  ;;  %v1425_v19 = vadd.f32 %v2665_v45, %v1424_v17  ;;  %v1402_v20 = vadd.f32 %v2676_v53, %v1401_v16 }
 0x21a   :  { %2264 = vmatprep.subr.bf16.mxu1 %v2464_v62  ;;  %2291 = vmatprep.subr.bf16.mxu0 %v2464_v62 }
 0x21b   :  { %v1168_v21 = vmax.f32 %v1167_v18, -1e+30  ;;  %v1426_v22 = vadd.f32 %v2665_v45, %v1425_v19  ;;  %v1403_v7 = vadd.f32 %v2676_v53, %v1402_v20  ;;  %v2078_v19 = vpop.f32.mrb[24].mxu1  ;;  %v1461_v20 = vld [vmem:[#allocation7 + $0x18] sm:$0xff] }
 0x21d   :  { %v1169_v23 = vmax.f32 %v1168_v21, -1e+30  ;;  %2266 = vmatpush3.bf16.msra.mxu1 %v2256_v2  ;;  %2293 = vmatpush3.bf16.msra.mxu0 %v2674_v52  ;;  %v1427_v24 = vadd.f32 %v2665_v45, %v1426_v22  ;;  %v1404_v25 = vadd.f32 %v2676_v53, %v1403_v7  ;;  %v930_v21 = vpop.f32.mrb[25].mxu1 }
 0x21e   :  { %2267 = vmatprep.subr.bf16.mxu1 %v2464_v62  ;;  %2294 = vmatprep.subr.bf16.mxu0 %v2464_v62 }
 0x21f   :  { %v1170_v26 = vmax.f32 %v1169_v23, -1e+30  ;;  %v1428_v27 = vadd.f32 %v2665_v45, %v1427_v24  ;;  %v1405_v28 = vadd.f32 %v2676_v53, %v1404_v25  ;;  %v2081_v22 = vpop.f32.mrb[26].mxu1 }
 0x220   :  { %v940_v7 = vpop.f32.mrb[27].mxu1 }
 0x221   :  { %v1171_v29 = vmax.f32 %v1170_v26, -1e+30  ;;  %2269 = vmatpush3.bf16.msra.mxu1 %v2256_v2  ;;  %2296 = vmatpush3.bf16.msra.mxu0 %v2674_v52  ;;  %v1429_v30 = vadd.f32 %v2665_v45, %v1428_v27  ;;  %v1406_v31 = vadd.f32 %v2676_v53, %v1405_v28  ;;  %v1389_v27 = vrot.slane %v2655_v3, 4 }
 0x222   :  { %2270 = vmatprep.subr.bf16.mxu1 %v2464_v62  ;;  %2297 = vmatprep.subr.bf16.mxu0 %v2464_v62 }
 0x223   :  { %v1172_v32 = vmax.f32 %v1171_v29, -1e+30  ;;  %v2725_v33 = vadd.f32 %v2665_v45, %v1429_v30  ;;  %v1407_v34 = vadd.f32 %v2676_v53, %v1406_v31  ;;  %v2084_v23 = vpop.f32.mrb[28].mxu1  ;;  %v1390_v28 = vadd.f32 %v1389_v27, %v2655_v3 }
 0x224   :  { %v950_v24 = vpop.f32.mrb[29].mxu1 }
 0x225   :  { %v1173_v35 = vmax.f32 %v1172_v32, -1e+30  ;;  %2272 = vmatpush3.bf16.msra.mxu1 %v2256_v2  ;;  %2299 = vmatpush3.bf16.msra.mxu0 %v2674_v52  ;;  %v1408_v37 = vadd.f32 %v2676_v53, %v1407_v34  ;;  %v1391_v29 = vrot.slane %v1390_v28, 2 }
 0x226   :  { %2273 = vmatprep.subr.bf16.mxu1 %v2464_v62 }
 0x227   :  { %v1174_v38 = vmax.f32 %v1173_v35, -1e+30  ;;  %v2732_v1 = vadd.f32 %v2676_v53, %v1408_v37  ;;  %v2087_v25 = vpop.f32.mrb[30].mxu1  ;;  %v1392_v30 = vadd.f32 %v1391_v29, %v1390_v28 }
 0x228   :  { %2191 = vmatmul.mubr.f32.vlgmr.msra.gmra.mrb[34].mxu0 %v1460_v36  ;;  %v960_v26 = vpop.f32.mrb[31].mxu1 }
 0x229   :  { %v1175_v60 = vmax.f32 %v1174_v38, -1e+30  ;;  %2275 = vmatpush3.bf16.msra.mxu1 %v2256_v2  ;;  %v1393_v31 = vrot.slane %v1392_v30, 1 }
 0x22a   :  { %2300 = vmatprep.subr.bf16.mxu1 %v2464_v62 }
 0x22b   :  { %v1176_v40 = vrot.slane %v1175_v60, 4 }
 0x22c   :  { %2156 = vmatmul.mubr.f32.vlgmr.msra.gmra.mrb[32].mxu1 %v1459_v39  ;;  %v1431_v39 = vrot.slane %v2725_v33, 4 }
 0x22d   :  { %v1177_v41 = vmax.f32 %v1175_v60, %v1176_v40  ;;  %2225 = vmatprep.mubr.msk.f32.mxu1 %vm2465_vm1, %v2466_v63 }
 0x22e   :  { %v1432_v40 = vadd.f32 %v1431_v39, %v2725_v33 }
 0x22f   :  { %v1178_v42 = vrot.slane %v1177_v41, 2 }
 0x230   :  { %v1433_v3 = vrot.slane %v1432_v40, 2 }
 0x231   :  { %v1179_v43 = vmax.f32 %v1177_v41, %v1178_v42  ;;  %v1410_v41 = vrot.slane %v2732_v1, 4 }
 0x233   :  { %v1180_v44 = vrot.slane %v1179_v43, 1  ;;  %v1411_v42 = vadd.f32 %v1410_v41, %v2732_v1 }
 0x235   :  { %v1181_v45 = vmax.f32 %v1179_v43, %v1180_v44  ;;  %v1434_v43 = vadd.f32 %v1433_v3, %v1432_v40  ;;  %v1412_v44 = vrot.slane %v1411_v42, 2 }
 0x237   :  { %v1230_v9 = vsub.f32 %v2678_v54, %v1181_v45  ;;  %v1231_v6 = vsub.f32 %v2670_v50, %v1181_v45  ;;  %v1232_v46 = vsub.f32 -1e+30, %v1181_v45  ;;  %v1435_v45 = vrot.slane %v1434_v43, 1 }
 0x239   :  { %v1342_v47 = vmul.f32 1.442695, %v1230_v9  ;;  %v1344_v48 = vmul.f32 1.442695, %v1231_v6  ;;  %v1346_v49 = vmul.f32 1.442695, %v1232_v46  ;;  %v1413_v9 = vadd.f32 %v1412_v44, %v1411_v42 }
 0x23a   :  { %v1436_v6 = vadd.f32 %v1435_v45, %v1434_v43 }
 0x23b   :  { %2351 = vpow2.f32 %v1342_v47  ;;  %v1414_v46 = vrot.slane %v1413_v9, 1 }
 0x23c   :  { %2353 = vpow2.f32 %v1344_v48 }
 0x23d   :  { %2355 = vpow2.f32 %v1346_v49  ;;  %v1415_v47 = vadd.f32 %v1414_v46, %v1413_v9 }
 0x245   :  { %v2352_v51 = vpop.eup %2351 }
 0x246   :  { %v2354_v52 = vpop.eup %2353 }
 0x247   :  { %v1437_v53 = vadd.f32 %v2354_v52, %v2352_v51  ;;  %v2301_v55 = vpack.c.bf16 %v2354_v52, %v2352_v51  ;;  %v2356_v63 = vpop.eup %2355 }
 0x248   :  { %v2304_v54 = vpack.c.bf16 %v2356_v63, %v2356_v63 }
 0x249   :  { %v1438_v56 = vadd.f32 %v2356_v63, %v1437_v53  ;;  %2302 = vmatpush3.bf16.msra.mxu1 %v2301_v55 }
 0x24a   :  { %2303 = vmatprep.subr.bf16.mxu1 %v2464_v62 }
 0x24b   :  { %v1439_v57 = vadd.f32 %v2356_v63, %v1438_v56 }
 0x24d   :  { %v1440_v50 = vadd.f32 %v2356_v63, %v1439_v57  ;;  %2305 = vmatpush3.bf16.msra.mxu1 %v2304_v54 }
 0x24e   :  { %2306 = vmatprep.subr.bf16.mxu1 %v2464_v62 }
 0x24f   :  { %v1441_v61 = vadd.f32 %v2356_v63, %v1440_v50 }
 0x251   :  { %v1442_v2 = vadd.f32 %v2356_v63, %v1441_v61  ;;  %2308 = vmatpush3.bf16.msra.mxu1 %v2304_v54 }
 0x252   :  { %2309 = vmatprep.subr.bf16.mxu1 %v2464_v62 }
 0x253   :  { %v1443_v4 = vadd.f32 %v2356_v63, %v1442_v2 }
 0x255   :  { %2311 = vmatpush3.bf16.msra.mxu1 %v2304_v54  ;;  %v1444_v10 = vadd.f32 %v2356_v63, %v1443_v4 }
 0x256   :  { %2312 = vmatprep.subr.bf16.mxu1 %v2464_v62 }
 0x257   :  { %v1445_v11 = vadd.f32 %v2356_v63, %v1444_v10 }
 0x259   :  { %2314 = vmatpush3.bf16.msra.mxu1 %v2304_v54  ;;  %v1446_v12 = vadd.f32 %v2356_v63, %v1445_v11 }
 0x25a   :  { %2315 = vmatprep.subr.bf16.mxu1 %v2464_v62 }
 0x25b   :  { %v1447_v13 = vadd.f32 %v2356_v63, %v1446_v12 }
 0x25d   :  { %2317 = vmatpush3.bf16.msra.mxu1 %v2304_v54  ;;  %v1448_v16 = vadd.f32 %v2356_v63, %v1447_v13 }
 0x25e   :  { %2318 = vmatprep.subr.bf16.mxu1 %v2464_v62 }
 0x25f   :  { %v1449_v0 = vadd.f32 %v2356_v63, %v1448_v16 }
 0x261   :  { %2320 = vmatpush3.bf16.msra.mxu1 %v2304_v54  ;;  %v1450_v17 = vadd.f32 %v2356_v63, %v1449_v0 }
 0x262   :  { %2321 = vmatprep.subr.bf16.mxu1 %v2464_v62  ;;  %v1394_v62 = vadd.f32 %v1393_v31, %v1392_v30 }
 0x263   :  { %v1451_v18 = vadd.f32 %v2356_v63, %v1450_v17 }
 0x264   :  { %2357 = vrcp.f32 %v1394_v62 }
 0x265   :  { %2323 = vmatpush3.bf16.msra.mxu1 %v2304_v54  ;;  %2359 = vrcp.f32 %v1436_v6  ;;  %v1452_v59 = vrot.slane %v1451_v18, 4 }
 0x266   :  { %2361 = vrcp.f32 %v1415_v47 }
 0x267   :  { %v1453_v61 = vadd.f32 %v1452_v59, %v1451_v18 }
 0x268   :  { %2226 = vmatmul.mubr.f32.vlgmr.msra.gmra.mrb[34].mxu1 %v1461_v20 }
 0x269   :  { %v1454_v2 = vrot.slane %v1453_v61, 2 }
 0x26b   :  { %v1455_v4 = vadd.f32 %v1454_v2, %v1453_v61 }
 0x26d   :  { %v1456_v5 = vrot.slane %v1455_v4, 1 }
 0x26e   :  { %v2358_v32 = vpop.eup %2357 }
 0x26f   :  { %v1746_v34 = vmul.f32 %v2358_v32, %v1394_v62  ;;  %v2360_v48 = vpop.eup %2359  ;;  %v1457_v8 = vadd.f32 %v1456_v5, %v1455_v4 }
 0x270   :  { %v1748_v49 = vmul.f32 %v2360_v48, %v1436_v6  ;;  %v2362_v51 = vpop.eup %2361 }
 0x271   :  { %v1750_v35 = vsub.f32 2.0, %v1746_v34  ;;  %v1747_v53 = vmul.f32 %v2362_v51, %v1415_v47  ;;  %2363 = vrcp.f32 %v1457_v8 }
 0x272   :  { %v1752_v52 = vsub.f32 2.0, %v1748_v49 }
 0x273   :  { %v1754_v36 = vmul.f32 %v2358_v32, %v1750_v35  ;;  %v1751_v55 = vsub.f32 2.0, %v1747_v53 }
 0x274   :  { %v1756_v33 = vmul.f32 %v2360_v48, %v1752_v52 }
 0x275   :  { %v1755_v1 = vmul.f32 %v2362_v51, %v1751_v55 }
 0x27b   :  { %v2364_v10 = vpop.eup %2363 }
 0x27c   :  { %v1749_v11 = vmul.f32 %v2364_v10, %v1457_v8 }
 0x27e   :  { %v1753_v12 = vsub.f32 2.0, %v1749_v11 }
 0x280   :  { %v1757_v13 = vmul.f32 %v2364_v10, %v1753_v12 }
 0x2bf   :  { %v1528_v37 = vpop.f32.mrb[32].mxu0 }
 0x2c0   :  { %v1758_v38 = vmul.f32 %v1754_v36, %v1528_v37  ;;  %v2122_v60 = vpop.f32.mrb[33].mxu0 }
 0x2c2   :  { %1762 = vst [vmem:[#allocation8] sm:$0xff] %v1758_v38 }
 0x2fb   :  { %v1668_v63 = vpop.f32.mrb[34].mxu0 }
 0x2fc   :  { %v1760_v56 = vmul.f32 %v1756_v33, %v1668_v63  ;;  %v2192_v57 = vpop.f32.mrb[35].mxu0 }
 0x2fe   :  { %1764 = vst [vmem:[#allocation8 + $0x10] sm:$0xff] %v1760_v56 }
 0x2ff   :  { %v1598_v54 = vpop.f32.mrb[32].mxu1 }
 0x300   :  { %v1759_v58 = vmul.f32 %v1755_v1, %v1598_v54  ;;  %v2157_v50 = vpop.f32.mrb[33].mxu1 }
 0x302   :  { %1763 = vst [vmem:[#allocation8 + $0x8] sm:$0xff] %v1759_v58 }
 0x33b   :  { %v1738_v14 = vpop.f32.mrb[34].mxu1 }
 0x33c   :  { %v1761_v15 = vmul.f32 %v1757_v13, %v1738_v14  ;;  %v2227_v16 = vpop.f32.mrb[35].mxu1 }
 0x33e   :  { %1765 = vst [vmem:[#allocation8 + $0x18] sm:$0xff] %v1761_v15 }
 0x33f   :  { %2442 = shalt.err (!%p2439_p0)
}
 0x340   :  { %s2443_s27 = scalar_lea.hbm %s2770_s3, 512 }
 0x341   :  { %p2444_p1 = scmp.ne.s32.totalorder %s2770_s3, %s2443_s27  ;;  %p2447_p2 = scmp.lt.u32.totalorder %s2443_s27, %s2770_s3 }
 0x343   :  { %p2449_p3 = pnand %p2447_p2, %p2444_p1 }
 0x345   :  { %2452 = shalt.err (!%p2449_p3)
}
 0x346   :  { %1777 = dma.vmem_to_hbm [thread:$0]  %s1772_s21, 512, %s2770_s3, [#allocation4], %s2461_s24, %s2461_s24, %s2462_s25  }
 0x347   :  { %2457 = dma.done.wait [#allocation4], 512  }
 0x348   :  { %2458 = vsyncadd [#allocation4], 4294966784 }
 0x349   :  { %1781 = vsyncpa [#allocation3], 1 }
 0x34a   :  { %1782 = vsyncpa [#allocation6], 1 }
 0x34b   :  { %1783 = vsyncpa [#allocation4], 1 }

</bundles_post_ra>
